<compile_context>
chip_gen: v6e
topology: v6e:2x2x1
jax: 0.10.0
libtpu: 0.0.40
codegen_flags: <defaults>
</compile_context>

<pallas_src>
import functools

import jax
import jax.numpy as jnp
from jax import lax
from jax.experimental import pallas as pl
from jax.experimental.pallas import tpu as pltpu


def _mlp_kernel(x_ref, w1_ref, b1_ref, w2_ref, b2_ref, w3_ref, b3_ref, o_ref,
                *, sub_rows):
    """One grid step = rows [i*tb, (i+1)*tb) of the batch.

    The (tb, D) x tile is processed in `sub_rows`-row sub-slices so the f32
    intermediates stay small while the per-grid-step DMA payload stays large.
    """
    tb = x_ref.shape[0]
    n_sub = tb // sub_rows                      # static
    b3 = b3_ref[0, 0]                           # scalar bias from SMEM

    def body(j, carry):
        start = pl.multiple_of(j * sub_rows, sub_rows)
        xs = x_ref[pl.ds(start, sub_rows), :]
        if xs.dtype != jnp.bfloat16:            # static dtype check (trace time)
            xs = xs.astype(jnp.bfloat16)

        # Layer 1: (sub, D) @ (D, 128) on the MXU, bf16 operands, f32 accumulation.
        h1 = jnp.dot(xs, w1_ref[...], preferred_element_type=jnp.float32) + b1_ref[...]
        h1 = jnp.maximum(h1, 0.0)

        # Layer 2: (sub, 128) @ (128, 128) on the MXU, bf16 operands, f32 accumulation.
        h2 = jnp.dot(h1.astype(jnp.bfloat16), w2_ref[...],
                     preferred_element_type=jnp.float32) + b2_ref[...]
        h2 = jnp.maximum(h2, 0.0)

        # Layer 3 (128 -> 1): contract the hidden dim of BOTH operands so the
        # result comes out as a lane-dense (1, sub) row in f32 (no lane-sparse
        # (sub, 1) column, no masked 1-lane stores).
        row = lax.dot_general(w3_ref[...], h2, (((1,), (1,)), ((), ())),
                              preferred_element_type=jnp.float32) + b3

        # Store row j of this tile's (1, n_sub, sub) output block: dynamic index
        # on the sublane axis only, lanes fully dense.
        o_ref[:, pl.ds(j, 1), :] = row.reshape(1, 1, sub_rows).astype(o_ref.dtype)
        return carry

    lax.fori_loop(0, n_sub, body, 0)


def _round_up(x, m):
    return ((x + m - 1) // m) * m


@functools.partial(jax.jit, static_argnames=("sub_rows", "x_stream_vmem_bytes"))
def value_network_forward(x, params, *, sub_rows=512,
                          x_stream_vmem_bytes=8 * 1024 * 1024):
    """Forward pass of ValueNetwork via a fused Pallas kernel.

    x: (B, D) float32 or bfloat16
    params: dict with w1 (D,128), b1 (1,128), w2 (128,128), b2 (1,128),
            w3 (128,1), b3 (1,1)   (stored as (in, out): y = x @ W + b)
    returns: (B, 1) float32
    """
    w1, b1 = params["w1"], params["b1"]
    w2, b2 = params["w2"], params["b2"]
    w3, b3 = params["w3"], params["b3"]

    B, D = x.shape
    H = w1.shape[1]                                   # 128

    # MXU layers take bf16 operands (f32 accumulation); final projection stays f32.
    w1_bf = w1.astype(jnp.bfloat16)
    w2_bf = w2.astype(jnp.bfloat16)
    b1 = b1.reshape(1, H).astype(jnp.float32)
    b2 = b2.reshape(1, H).astype(jnp.float32)
    w3_row = w3.reshape(1, H).astype(jnp.float32)
    b3_s = b3.reshape(1, 1).astype(jnp.float32)

    # ---- batch-tile sizing -------------------------------------------------
    bytes_per_row = D * x.dtype.itemsize
    if B <= sub_rows:
        # Tiny batch: single full-array tile, single sub-slice.
        tb = _round_up(max(B, 1), 8)
        sub = tb
    else:
        # Largest tile the double-buffered x stream budget allows, capped at 8192.
        tb_budget = max(sub_rows,
                        (x_stream_vmem_bytes // (2 * bytes_per_row))
                        // sub_rows * sub_rows)
        tb = min(tb_budget, 8192)
        # Rebalance: >= 2 grid steps (v7x has 2 TensorCores and the 'parallel'
        # axis shards across them) and minimal trailing-tile padding waste.
        num_steps = max(2, pl.cdiv(B, tb))
        tb = _round_up(pl.cdiv(B, num_steps), sub_rows)
        sub = sub_rows

    n_sub = tb // sub
    B_pad = _round_up(B, tb)                          # full tiles only
    if B_pad != B:
        x = jnp.pad(x, ((0, B_pad - B), (0, 0)))
    num_tiles = B_pad // tb
    grid = (num_tiles,)

    cost = pl.CostEstimate(
        flops=2 * B_pad * (D * H + H * H + H),
        transcendentals=0,
        bytes_accessed=B_pad * bytes_per_row + B_pad * 4      # x in, out
        + (D * H + H * H) * 2                                 # bf16 weights
        + (3 * H + 1) * 4,                                    # biases + w3 row
    )

    out = pl.pallas_call(
        functools.partial(_mlp_kernel, sub_rows=sub),
        out_shape=jax.ShapeDtypeStruct((num_tiles, n_sub, sub), jnp.float32),
        grid_spec=pltpu.PrefetchScalarGridSpec(
            num_scalar_prefetch=0,
            grid=grid,
            in_specs=[
                pl.BlockSpec((tb, D), lambda i: (i, 0)),      # x tile (batch-tiled)
                pl.BlockSpec((D, H), lambda i: (0, 0)),       # w1 (bf16, resident)
                pl.BlockSpec((1, H), lambda i: (0, 0)),       # b1 (f32)
                pl.BlockSpec((H, H), lambda i: (0, 0)),       # w2 (bf16, resident)
                pl.BlockSpec((1, H), lambda i: (0, 0)),       # b2 (f32)
                pl.BlockSpec((1, H), lambda i: (0, 0)),       # w3 row (f32)
                pl.BlockSpec(memory_space=pltpu.MemorySpace.SMEM),  # b3 scalar
            ],
            out_specs=pl.BlockSpec((1, n_sub, sub), lambda i: (i, 0, 0)),
        ),
        compiler_params=pltpu.CompilerParams(
            dimension_semantics=("parallel",),
            vmem_limit_bytes=32 * 1024 * 1024,
        ),
        cost_estimate=cost,
    )(x, w1_bf, b1, w2_bf, b2, w3_row, b3_s)

    # (num_tiles, n_sub, sub) row-major == batch order; drop padded rows.
    return out.reshape(-1)[:B].reshape(B, 1)


def init_params(key, input_dim, hidden=128):
    """Deterministic init mimicking PyTorch nn.Linear default (uniform +/- 1/sqrt(fan_in))."""
    ks = jax.random.split(key, 6)

    def lin(kw, kb, fan_in, fan_out):
        bound = 1.0 / jnp.sqrt(fan_in)
        w = jax.random.uniform(kw, (fan_in, fan_out), jnp.float32, -bound, bound)
        b = jax.random.uniform(kb, (1, fan_out), jnp.float32, -bound, bound)
        return w, b

    w1, b1 = lin(ks[0], ks[1], input_dim, hidden)
    w2, b2 = lin(ks[2], ks[3], hidden, hidden)
    w3, b3 = lin(ks[4], ks[5], hidden, 1)
    return {"w1": w1, "b1": b1, "w2": w2, "b2": b2, "w3": w3, "b3": b3}


def reference_forward_f32(x, p):
    h1 = jnp.maximum(x @ p["w1"] + p["b1"], 0.0)
    h2 = jnp.maximum(h1 @ p["w2"] + p["b2"], 0.0)
    return h2 @ p["w3"] + p["b3"]


def reference_forward_bf16(x, p):
    # Matches the kernel's bf16-operand / f32-accumulate arithmetic.
    h1 = jnp.dot(x.astype(jnp.bfloat16), p["w1"].astype(jnp.bfloat16),
                 preferred_element_type=jnp.float32) + p["b1"]
    h1 = jnp.maximum(h1, 0.0)
    h2 = jnp.dot(h1.astype(jnp.bfloat16), p["w2"].astype(jnp.bfloat16),
                 preferred_element_type=jnp.float32) + p["b2"]
    h2 = jnp.maximum(h2, 0.0)
    return jnp.dot(h2, p["w3"].astype(jnp.float32)) + p["b3"]


if __name__ == "__main__":
    key = jax.random.PRNGKey(0)
    k_x, k_x2, k_p = jax.random.split(key, 3)

    D = 32
    params = init_params(k_p, D)

    # Small batch: single tile, single sub-slice.
    B = 64
    x = jax.random.normal(k_x, (B, D), jnp.float32)
    out = jax.block_until_ready(value_network_forward(x, params))
    assert out.shape == (B, 1)
    ref_bf16 = reference_forward_bf16(x, params)
    assert jnp.allclose(out, ref_bf16, atol=1e-3, rtol=1e-3), "mismatch vs bf16 reference"
    ref_f32 = reference_forward_f32(x, params)
    assert jnp.allclose(out, ref_f32, atol=5e-2, rtol=5e-2), "mismatch vs f32 reference"

    # Larger batch: exercises the multi-step grid, batch padding to a tile
    # multiple, the in-kernel sub-tile loop and the lane-dense output stores.
    B2 = 1152
    x2 = jax.random.normal(k_x2, (B2, D), jnp.float32)
    out2 = jax.block_until_ready(value_network_forward(x2, params))
    assert out2.shape == (B2, 1)
    ref2 = reference_forward_bf16(x2, params)
    assert jnp.allclose(out2, ref2, atol=1e-3, rtol=1e-3), "mismatch vs bf16 reference (large B)"

    print("KERNEL_OK")
</pallas_src>

<mosaic_0001>
module attributes {stable_mosaic.version = 11 : i64} {
  func.func @_mlp_kernel(%arg0: i32, %arg1: memref<64x32xf32, #tpu.memory_space<vmem>>, %arg2: memref<32x128xbf16, #tpu.memory_space<vmem>>, %arg3: memref<1x128xf32, #tpu.memory_space<vmem>>, %arg4: memref<128x128xbf16, #tpu.memory_space<vmem>>, %arg5: memref<1x128xf32, #tpu.memory_space<vmem>>, %arg6: memref<1x128xf32, #tpu.memory_space<vmem>>, %arg7: memref<1x1xf32, #tpu.memory_space<smem>>, %arg8: memref<1x1x64xf32, #tpu.memory_space<vmem>>) attributes {dimension_semantics = [#tpu.dimension_semantics<parallel>], iteration_bounds = array<i64: 1>, scalar_prefetch = 0 : i64, scratch_operands = 0 : i64, tpu.core_type = #tpu.core_type<tc>, window_params = [{transform_indices = @transform_0, window_bounds = array<i64: 64, 32>}, {pipeline_mode = #tpu.pipeline_mode<synchronous>, transform_indices = @transform_1, window_bounds = array<i64: 32, 128>}, {pipeline_mode = #tpu.pipeline_mode<synchronous>, transform_indices = @transform_2, window_bounds = array<i64: 1, 128>}, {pipeline_mode = #tpu.pipeline_mode<synchronous>, transform_indices = @transform_3, window_bounds = array<i64: 128, 128>}, {pipeline_mode = #tpu.pipeline_mode<synchronous>, transform_indices = @transform_4, window_bounds = array<i64: 1, 128>}, {pipeline_mode = #tpu.pipeline_mode<synchronous>, transform_indices = @transform_5, window_bounds = array<i64: 1, 128>}, {transform_indices = @transform_6, window_bounds = array<i64: 1, 1>}, {transform_indices = @transform_7, window_bounds = array<i64: 1, 1, 64>}]} {
    %c0 = arith.constant 0 : index
    %c0_0 = arith.constant 0 : index
    %0 = memref.load %arg7[%c0, %c0_0] : memref<1x1xf32, #tpu.memory_space<smem>>
    %c0_i32 = arith.constant 0 : i32
    %c64_i32 = arith.constant 64 : i32
    %1 = arith.muli %c0_i32, %c64_i32 : i32
    %2 = tpu.assume_multiple %1, 64 : i32
    %3 = arith.index_cast %2 : i32 to index
    %c0_1 = arith.constant 0 : index
    %4 = vector.load %arg1[%3, %c0_1] : memref<64x32xf32, #tpu.memory_space<vmem>>, vector<64x32xf32>
    %5 = arith.truncf %4 : vector<64x32xf32> to vector<64x32xbf16>
    %c0_2 = arith.constant 0 : index
    %c0_3 = arith.constant 0 : index
    %6 = vector.load %arg2[%c0_2, %c0_3] : memref<32x128xbf16, #tpu.memory_space<vmem>>, vector<32x128xbf16>
    %cst = arith.constant dense<0.000000e+00> : vector<64x128xf32>
    %7 = tpu.matmul %5, %6, %cst {dimension_numbers = #tpu.dot_dimension_numbers<[1], [0], [0], [1], [0, 0, 1, 1], [], []>} : vector<64x32xbf16>, vector<32x128xbf16>, vector<64x128xf32> -> vector<64x128xf32>
    %c0_4 = arith.constant 0 : index
    %c0_5 = arith.constant 0 : index
    %8 = vector.load %arg3[%c0_4, %c0_5] : memref<1x128xf32, #tpu.memory_space<vmem>>, vector<1x128xf32>
    %9 = vector.broadcast %8 : vector<1x128xf32> to vector<64x128xf32>
    %10 = arith.addf %7, %9 : vector<64x128xf32>
    %cst_6 = arith.constant 0.000000e+00 : f32
    %11 = vector.broadcast %cst_6 : f32 to vector<64x128xf32>
    %12 = arith.maximumf %10, %11 : vector<64x128xf32>
    %13 = arith.truncf %12 : vector<64x128xf32> to vector<64x128xbf16>
    %c0_7 = arith.constant 0 : index
    %c0_8 = arith.constant 0 : index
    %14 = vector.load %arg4[%c0_7, %c0_8] : memref<128x128xbf16, #tpu.memory_space<vmem>>, vector<128x128xbf16>
    %cst_9 = arith.constant dense<0.000000e+00> : vector<64x128xf32>
    %15 = tpu.matmul %13, %14, %cst_9 {dimension_numbers = #tpu.dot_dimension_numbers<[1], [0], [0], [1], [0, 0, 1, 1], [], []>} : vector<64x128xbf16>, vector<128x128xbf16>, vector<64x128xf32> -> vector<64x128xf32>
    %c0_10 = arith.constant 0 : index
    %c0_11 = arith.constant 0 : index
    %16 = vector.load %arg5[%c0_10, %c0_11] : memref<1x128xf32, #tpu.memory_space<vmem>>, vector<1x128xf32>
    %17 = vector.broadcast %16 : vector<1x128xf32> to vector<64x128xf32>
    %18 = arith.addf %15, %17 : vector<64x128xf32>
    %cst_12 = arith.constant 0.000000e+00 : f32
    %19 = vector.broadcast %cst_12 : f32 to vector<64x128xf32>
    %20 = arith.maximumf %18, %19 : vector<64x128xf32>
    %c0_13 = arith.constant 0 : index
    %c0_14 = arith.constant 0 : index
    %21 = vector.load %arg6[%c0_13, %c0_14] : memref<1x128xf32, #tpu.memory_space<vmem>>, vector<1x128xf32>
    %cst_15 = arith.constant dense<0.000000e+00> : vector<1x64xf32>
    %22 = tpu.matmul %21, %20, %cst_15 {dimension_numbers = #tpu.dot_dimension_numbers<[1], [1], [0], [0], [0, 0, 1, 0], [], []>} : vector<1x128xf32>, vector<64x128xf32>, vector<1x64xf32> -> vector<1x64xf32>
    %23 = vector.broadcast %0 : f32 to vector<1x64xf32>
    %24 = arith.addf %22, %23 : vector<1x64xf32>
    %25 = vector.shape_cast %24 : vector<1x64xf32> to vector<1x1x64xf32>
    %c0_16 = arith.constant 0 : index
    %26 = arith.index_cast %c0_i32 : i32 to index
    %c0_17 = arith.constant 0 : index
    %27 = vector.load %arg8[%c0_16, %26, %c0_17] : memref<1x1x64xf32, #tpu.memory_space<vmem>>, vector<1x1x64xf32>
    tpu.vector_store %arg8[%c0_16, %26, %c0_17], %25 {strides = array<i32>} : memref<1x1x64xf32, #tpu.memory_space<vmem>>, vector<1x1x64xf32>,
    %c1_i32 = arith.constant 1 : i32
    return
  }
  func.func @transform_0(%arg0: i32) -> (i32, i32) {
    %c0_i32 = arith.constant 0 : i32
    %c0_i32_0 = arith.constant 0 : i32
    return %arg0, %c0_i32 : i32, i32
  }
  func.func @transform_1(%arg0: i32) -> (i32, i32) {
    %c0_i32 = arith.constant 0 : i32
    %c0_i32_0 = arith.constant 0 : i32
    %c0_i32_1 = arith.constant 0 : i32
    return %c0_i32, %c0_i32_0 : i32, i32
  }
  func.func @transform_2(%arg0: i32) -> (i32, i32) {
    %c0_i32 = arith.constant 0 : i32
    %c0_i32_0 = arith.constant 0 : i32
    %c0_i32_1 = arith.constant 0 : i32
    return %c0_i32, %c0_i32_0 : i32, i32
  }
  func.func @transform_3(%arg0: i32) -> (i32, i32) {
    %c0_i32 = arith.constant 0 : i32
    %c0_i32_0 = arith.constant 0 : i32
    %c0_i32_1 = arith.constant 0 : i32
    return %c0_i32, %c0_i32_0 : i32, i32
  }
  func.func @transform_4(%arg0: i32) -> (i32, i32) {
    %c0_i32 = arith.constant 0 : i32
    %c0_i32_0 = arith.constant 0 : i32
    %c0_i32_1 = arith.constant 0 : i32
    return %c0_i32, %c0_i32_0 : i32, i32
  }
  func.func @transform_5(%arg0: i32) -> (i32, i32) {
    %c0_i32 = arith.constant 0 : i32
    %c0_i32_0 = arith.constant 0 : i32
    %c0_i32_1 = arith.constant 0 : i32
    return %c0_i32, %c0_i32_0 : i32, i32
  }
  func.func @transform_6(%arg0: i32) -> (i32, i32) {
    %c0_i32 = arith.constant 0 : i32
    %c0_i32_0 = arith.constant 0 : i32
    %c0_i32_1 = arith.constant 0 : i32
    return %c0_i32, %c0_i32_0 : i32, i32
  }
  func.func @transform_7(%arg0: i32) -> (i32, i32, i32) {
    %c0_i32 = arith.constant 0 : i32
    %c0_i32_0 = arith.constant 0 : i32
    %c0_i32_1 = arith.constant 0 : i32
    return %arg0, %c0_i32, %c0_i32_0 : i32, i32, i32
  }
}

</mosaic_0001>

<bundles_post_ra>
// kernel: value_network_forward.1
= control target key start
LH: loop header
LB: loop body
LE: loop exit
PB: predicated region body
PF: predicated region fallthrough
CT: control target
= control target key end

     0   :  { %vm65_vm0 = vcmask 261120   ;;  %s636_s0 = inlined_call_operand.vmem [shape: f32[64,32], index: 0, kind: input, shape index: {}]   ;;  %s637_s1 = inlined_call_operand.vmem [shape: bf16[32,128], index: 1, kind: input, shape index: {}]   ;;  %s638_s2 = inlined_call_operand.vmem [shape: f32[1,128], index: 2, kind: input, shape index: {}]   ;;  %s639_s3 = inlined_call_operand.vmem [shape: bf16[128,128], index: 3, kind: input, shape index: {}]   ;;  %s640_s4 = inlined_call_operand.vmem [shape: f32[1,128], index: 4, kind: input, shape index: {}]   ;;  %s641_s5 = inlined_call_operand.vmem [shape: f32[1,128], index: 5, kind: input, shape index: {}]   ;;  %s642_s6 = inlined_call_operand.<no memory space> [shape: f32[1,1], index: 6, kind: input, shape index: {}]   ;;  %s643_s7 = inlined_call_operand.hbm [shape: f32[1,1,64], index: 7, kind: output, shape index: {}]  }
   0x1   :  { %v488_v0 = vld [vmem:[%s637_s1 + $0x8] sm:$0xff]   ;;  %v489_v1 = vld [vmem:[%s637_s1] sm:$0xff]   ;;  %v32_v5 = vld [vmem:[%s636_s0 + $0x10] sm:$0xff] }
   0x2   :  { %430 = vmatprep.subr.bf16.mxu0 %v488_v0  ;;  %v30_v2 = vld [vmem:[%s636_s0] sm:$0xff]  ;;  %v31_v3 = vld [vmem:[%s636_s0 + $0x8] sm:$0xff]  ;;  %v33_v6 = vld [vmem:[%s636_s0 + $0x18] sm:$0xff] }
   0x3   :  { %431 = vmatpush3.bf16.msra.mxu0 %v488_v0  ;;  %v38_v4 = vpack.c.bf16 %v31_v3, %v30_v2  ;;  %v34_v7 = vld [vmem:[%s636_s0 + $0x20] sm:$0xff]  ;;  %v35_v8 = vld [vmem:[%s636_s0 + $0x28] sm:$0xff]  ;;  %v490_v9 = vld [vmem:[%s639_s3 + $0x38] sm:$0xff]   ;;  %v39_v10 = vpack.c.bf16 %v33_v6, %v32_v5 }
   0x4   :  { %432 = vmatprep.subr.bf16.mxu0 %v489_v1  ;;  %v491_v11 = vld [vmem:[%s639_s3 + $0x30] sm:$0xff]   ;;  %v40_v12 = vpack.c.bf16 %v35_v8, %v34_v7  ;;  %442 = vmatprep.subr.bf16.mxu1 %v490_v9  ;;  %v37_v14 = vld [vmem:[%s636_s0 + $0x38] sm:$0xff]  ;;  %v492_v15 = vld [vmem:[%s639_s3 + $0x28] sm:$0xff]  }
   0x5   :  { %434 = vmatprep.mubr.msk.bf16.mxu0 %vm65_vm0, %v38_v4  ;;  %443 = vmatpush3.bf16.msra.mxu1 %v490_v9  ;;  %v36_v13 = vld [vmem:[%s636_s0 + $0x30] sm:$0xff] }
   0x6   :  { %444 = vmatprep.subr.bf16.mxu1 %v491_v11 }
   0x7   :  { %433 = vmatpush3.bf16.msra.mxu0 %v489_v1 }
   0xa   :  { %435 = vmatmul.mubr.msk.bf16.vlgmr.msra.gmra.mxu0 %vm65_vm0, %v39_v10 }
   0xb   :  { %438 = vmatprep.mubr.msk.bf16.mxu0 %vm65_vm0, %v40_v12 }
   0xc   :  { %13 = vsyncpa [#allocation4], 0  ;;  %445 = vmatpush3.bf16.msra.mxu1 %v491_v11  ;;  %v493_v16 = vld [vmem:[%s639_s3 + $0x20] sm:$0xff]   ;;  %v41_v17 = vpack.c.bf16 %v37_v14, %v36_v13  ;;  %v494_v18 = vld [vmem:[%s639_s3 + $0x18] sm:$0xff]   ;;  %v520_v51 = vmov 0.0   ;;  %vm521_vm1 = vmmov 0   ;;  %v300_v14 = vstv %s642_s6 }
   0xd   :  { %446 = vmatprep.subr.bf16.mxu1 %v492_v15  ;;  %v495_v19 = vld [vmem:[%s639_s3 + $0x10] sm:$0xff]   ;;  %v496_v20 = vld [vmem:[%s639_s3 + $0x8] sm:$0xff]   ;;  %v497_v21 = vld [vmem:[%s639_s3] sm:$0xff]   ;;  %466 = vmatprep.subr.mxu0 %v520_v51  ;;  %s522_s16 = smov [#allocation3]   ;;  %vm371_vm2 = vcmask 516096  }
   0xe   :  { %v387_v24 = vld [vmem:[%s638_s2] ss:$0 sm:$0xff]  ;;  %s379_s17 = sshll.u32 %s522_s16, 4  ;;  %s380_s17 = int_to_ptr.vmem [resolvable:$true] %s379_s17 }
   0xf   :  { %v394_v58 = vld [vmem:[%s640_s4] ss:$0 sm:$0xff]  ;;  %s498_s18 = scalar_lea.vmem %s380_s17, 16  ;;  %s502_s19 = scalar_lea.vmem %s380_s17, 32 }
  0x10   :  { %447 = vmatpush3.bf16.msra.mxu1 %v492_v15  ;;  %v299_v13 = vld [vmem:[%s641_s5] sm:$0x1]  ;;  %p499_p0 = scmp.ne.s32.totalorder %s380_s17, %s498_s18  ;;  %p503_p1 = scmp.lt.s32.totalorder %s380_s17, %s380_s17 }
  0x11   :  { %448 = vmatprep.subr.bf16.mxu1 %v493_v16  ;;  %p504_p2 = scmp.lt.s32.totalorder %s502_s19, %s498_s18 }
  0x12   :  { %439 = vmatmul.mubr.msk.bf16.gmra.mxu0 %vm65_vm0, %v41_v17 }
  0x13   :  { %482 = vmatprep.mubr.msk.f32.mxu0 %vm521_vm1, %v520_v51  ;;  %p505_p3 = por %p504_p2, %p503_p1 }
  0x14   :  { %449 = vmatpush3.bf16.msra.mxu1 %v493_v16 }
  0x15   :  { %450 = vmatprep.subr.bf16.mxu1 %v494_v18  ;;  %p506_p4 = pnand %p505_p3, %p499_p0 }
  0x18   :  { %451 = vmatpush3.bf16.msra.mxu1 %v494_v18 }
  0x19   :  { %452 = vmatprep.subr.bf16.mxu1 %v495_v19 }
  0x1c   :  { %453 = vmatpush3.bf16.msra.mxu1 %v495_v19 }
  0x1d   :  { %454 = vmatprep.subr.bf16.mxu1 %v496_v20 }
  0x20   :  { %455 = vmatpush3.bf16.msra.mxu1 %v496_v20 }
  0x21   :  { %456 = vmatprep.subr.bf16.mxu1 %v497_v21 }
  0x24   :  { %457 = vmatpush3.bf16.msra.mxu1 %v497_v21 }
  0xca   :  { %v436_v22 = vpop.f32.mrf.mxu0 }
  0xcb   :  { %v121_v28 = vadd.f32 %v436_v22, %v387_v24 }
  0xcc   :  { %v112_v23 = vpop.f32.mrf.mxu0 }
  0xcd   :  { %v113_v26 = vadd.f32 %v387_v24, %v112_v23  ;;  %v145_v35 = vmax.f32 %v121_v28, 0.0 }
  0xce   :  { %v437_v25 = vpop.f32.mrf.mxu0 }
  0xcf   :  { %v124_v27 = vadd.f32 %v437_v25, %v387_v24  ;;  %v143_v33 = vmax.f32 %v113_v26, 0.0 }
  0xd0   :  { %v115_v29 = vpop.f32.mrf.mxu0 }
  0xd1   :  { %v116_v30 = vadd.f32 %v387_v24, %v115_v29  ;;  %v146_v31 = vmax.f32 %v124_v27, 0.0 }
  0xd2   :  { %v440_v32 = vpop.f32.mrf.mxu0 }
  0xd3   :  { %v144_v34 = vmax.f32 %v116_v30, 0.0  ;;  %v152_v38 = vpack.c.bf16 %v146_v31, %v145_v35  ;;  %v137_v42 = vadd.f32 %v440_v32, %v387_v24 }
  0xd4   :  { %v128_v36 = vpop.f32.mrf.mxu0 }
  0xd5   :  { %v151_v37 = vpack.c.bf16 %v144_v34, %v143_v33  ;;  %v129_v40 = vadd.f32 %v387_v24, %v128_v36  ;;  %v149_v48 = vmax.f32 %v137_v42, 0.0 }
  0xd6   :  { %v441_v39 = vpop.f32.mrf.mxu0 }
  0xd7   :  { %v140_v41 = vadd.f32 %v441_v39, %v387_v24  ;;  %458 = vmatprep.mubr.bf16.mxu1 %v151_v37  ;;  %v147_v46 = vmax.f32 %v129_v40, 0.0 }
  0xd8   :  { %v131_v43 = vpop.f32.mrf.mxu0  ;;  %459 = vmatmul.mubr.bf16.vlgmr.msra.gmra.mxu1 %v152_v38 }
  0xd9   :  { %v132_v44 = vadd.f32 %v387_v24, %v131_v43  ;;  %v150_v45 = vmax.f32 %v140_v41, 0.0 }
  0xdb   :  { %v148_v47 = vmax.f32 %v132_v44, 0.0  ;;  %v154_v50 = vpack.c.bf16 %v150_v45, %v149_v48 }
  0xdd   :  { %v153_v49 = vpack.c.bf16 %v148_v47, %v147_v46 }
  0xdf   :  { %462 = vmatprep.mubr.bf16.mxu1 %v153_v49 }
  0xe0   :  { %463 = vmatmul.mubr.bf16.gmra.mxu1 %v154_v50 }
 0x198   :  { %v460_v52 = vpop.f32.mrf.mxu1 }
 0x199   :  { %v269_v6 = vadd.f32 %v460_v52, %v394_v58 }
 0x19a   :  { %v260_v53 = vpop.f32.mrf.mxu1 }
 0x19b   :  { %v293_v8 = vmax.f32 %v269_v6, 0.0  ;;  %v261_v10 = vadd.f32 %v394_v58, %v260_v53 }
 0x19c   :  { %v461_v54 = vpop.f32.mrf.mxu1 }
 0x19d   :  { %v272_v4 = vadd.f32 %v461_v54, %v394_v58  ;;  %v291_v12 = vmax.f32 %v261_v10, 0.0 }
 0x19e   :  { %v263_v55 = vpop.f32.mrf.mxu1 }
 0x19f   :  { %v294_v7 = vmax.f32 %v272_v4, 0.0  ;;  %v264_v9 = vadd.f32 %v394_v58, %v263_v55 }
 0x1a0   :  { %v464_v56 = vpop.f32.mrf.mxu1 }
 0x1a1   :  { %v285_v61 = vadd.f32 %v464_v56, %v394_v58  ;;  %v292_v11 = vmax.f32 %v264_v9, 0.0 }
 0x1a2   :  { %v276_v57 = vpop.f32.mrf.mxu1 }
 0x1a3   :  { %v297_v0 = vmax.f32 %v285_v61, 0.0  ;;  %v277_v2 = vadd.f32 %v394_v58, %v276_v57 }
 0x1a4   :  { %v465_v59 = vpop.f32.mrf.mxu1 }
 0x1a5   :  { %v288_v60 = vadd.f32 %v465_v59, %v394_v58  ;;  %v295_v5 = vmax.f32 %v277_v2, 0.0 }
 0x1a6   :  { %v279_v63 = vpop.f32.mrf.mxu1 }
 0x1a7   :  { %v298_v62 = vmax.f32 %v288_v60, 0.0  ;;  %v280_v1 = vadd.f32 %v394_v58, %v279_v63 }
 0x1a9   :  { %467 = vmatpush3.xpose.msra.mxu0 %v298_v62  ;;  %v296_v3 = vmax.f32 %v280_v1, 0.0 }
 0x1aa   :  { %468 = vmatprep.subr.mxu0 %v520_v51 }
 0x1ad   :  { %469 = vmatpush3.xpose.msra.mxu0 %v297_v0 }
 0x1ae   :  { %470 = vmatprep.subr.mxu0 %v520_v51 }
 0x1b1   :  { %471 = vmatpush3.xpose.msra.mxu0 %v296_v3 }
 0x1b2   :  { %472 = vmatprep.subr.mxu0 %v520_v51 }
 0x1b5   :  { %473 = vmatpush3.xpose.msra.mxu0 %v295_v5 }
 0x1b6   :  { %474 = vmatprep.subr.mxu0 %v520_v51 }
 0x1b9   :  { %475 = vmatpush3.xpose.msra.mxu0 %v294_v7 }
 0x1ba   :  { %476 = vmatprep.subr.mxu0 %v520_v51 }
 0x1bd   :  { %477 = vmatpush3.xpose.msra.mxu0 %v293_v8 }
 0x1be   :  { %478 = vmatprep.subr.mxu0 %v520_v51 }
 0x1c1   :  { %479 = vmatpush3.xpose.msra.mxu0 %v292_v11 }
 0x1c2   :  { %480 = vmatprep.subr.mxu0 %v520_v51 }
 0x1c5   :  { %481 = vmatpush3.xpose.msra.mxu0 %v291_v12 }
 0x1c8   :  { %483 = vmatmul.mubr.f32.vlgmr.msra.gmra.mxu0 %v299_v13 }
 0x288   :  { %v367_v15 = vpop.f32.mrf.mxu0 }
 0x289   :  { %v368_v16 = vadd.f32 %v367_v15, %v300_v14 }
 0x28a   :  { %v484_v17 = vpop.f32.mrf.mxu0 }
 0x28b   :  { %372 = vst.msk [vmem:[#allocation3] sm:$0x1] %vm371_vm2, %v368_v16 }
 0x28c   :  { %509 = shalt.err (!%p506_p4)
}
 0x28d   :  { %382 = dma.vmem_to_hbm [thread:$0]  %s380_s17, 16, %s643_s7, [#allocation4]  }
 0x28e   :  { %518 = dma.done.wait [#allocation4], 16  }
 0x28f   :  { %519 = vsyncadd [#allocation4], 4294967280 }
 0x290   :  { %386 = vsyncpa [#allocation4], 1 }

</bundles_post_ra>
